<compile_context>
chip_gen: v7x
topology: tpu7x:2x2x1
jax: 0.10.0
libtpu: 0.0.40
codegen_flags: <defaults>
</compile_context>

<pallas_src>
import math
import functools

import jax
import jax.numpy as jnp
from jax.experimental import pallas as pl
from jax.experimental.pallas import tpu as pltpu


# ---------------------------------------------------------------------------
# Small integer-hash helpers (portable fallback used only off-TPU)
# ---------------------------------------------------------------------------
def _i32(v: int) -> int:
    """Reinterpret an unsigned 32-bit constant as a signed int32 Python int."""
    v &= 0xFFFFFFFF
    return v - (1 << 32) if v >= (1 << 31) else v


_GOLDEN = _i32(0x9E3779B9)
_MIX_A = _i32(0x7FEB352D)
_MIX_B = _i32(0x846CA68B)
_MASK23 = (1 << 23) - 1


def _srl(x, k: int):
    """Logical right shift of int32 by static k (arithmetic shift + mask)."""
    return (x >> k) & jnp.int32((1 << (32 - k)) - 1)


def _hash_u23(idx, seed_scalar):
    """lowbias32-style finalizer; returns non-negative int32 in [0, 2^23)."""
    h = idx ^ (seed_scalar * jnp.int32(_GOLDEN))
    h = h ^ _srl(h, 16)
    h = h * jnp.int32(_MIX_A)
    h = h ^ _srl(h, 15)
    h = h * jnp.int32(_MIX_B)
    h = h ^ _srl(h, 16)
    return h & jnp.int32(_MASK23)


# ---------------------------------------------------------------------------
# Buffer construction (deterministic, mirrors the PyTorch __init__)
# ---------------------------------------------------------------------------
def make_pos_encoding(max_len: int, dim_model: int) -> jnp.ndarray:
    positions = jnp.arange(max_len, dtype=jnp.float32)[:, None]              # (max_len, 1)
    division_term = jnp.exp(
        jnp.arange(0, dim_model, 2, dtype=jnp.float32) * (-math.log(10000.0) / dim_model)
    )                                                                        # (dim_model//2,)
    pe = jnp.zeros((max_len, dim_model), dtype=jnp.float32)
    pe = pe.at[:, 0::2].set(jnp.sin(positions * division_term))
    pe = pe.at[:, 1::2].set(jnp.cos(positions * division_term))
    # unsqueeze(0).transpose(0, 1) -> (max_len, 1, dim_model)
    return pe[:, None, :]


# ---------------------------------------------------------------------------
# Pallas kernel: out = dropout(x + pe)   (inverted dropout, scale 1/(1-p))
# ---------------------------------------------------------------------------
def _pe_dropout_kernel(seed_ref, x_ref, pe_ref, o_ref, *,
                       dropout_p, apply_dropout, use_hw_prng,
                       tile_s, tile_b, batch, dim):
    x = x_ref[...]                       # (ts, tb, D) in the input dtype
    pe = pe_ref[...]                     # (ts, 1, D)  in the input dtype
    y = x + pe                           # broadcast add over the batch axis

    if apply_dropout and dropout_p > 0.0:
        keep_prob = 1.0 - float(dropout_p)
        thresh = min(int(round(keep_prob * (1 << 23))), 1 << 23)

        if use_hw_prng:
            # Hardware PRNG: one random vreg stream instead of ~20 VALU
            # ops/element of integer hashing.  Seed per block with the grid
            # coordinates so tiles (and megacore shards) are decorrelated.
            pltpu.prng_seed(seed_ref[0], pl.program_id(0), pl.program_id(1))
            bits = pltpu.bitcast(pltpu.prng_random_bits(y.shape), jnp.int32)
            r23 = bits & jnp.int32(_MASK23)
        else:
            # Portable fallback (interpret / non-TPU): block-independent hash
            # keyed on (seed, global element index).
            s_idx = jax.lax.broadcasted_iota(jnp.int32, y.shape, 0) + pl.program_id(0) * tile_s
            b_idx = jax.lax.broadcasted_iota(jnp.int32, y.shape, 1) + pl.program_id(1) * tile_b
            d_idx = jax.lax.broadcasted_iota(jnp.int32, y.shape, 2)
            lin = (s_idx * jnp.int32(batch) + b_idx) * jnp.int32(dim) + d_idx
            r23 = _hash_u23(lin, seed_ref[0])

        keep = r23 < jnp.int32(thresh)
        y = jnp.where(keep, y * (1.0 / keep_prob), 0.0)

    o_ref[...] = y.astype(o_ref.dtype)


# ---------------------------------------------------------------------------
# Tile sizing: largest block that fits the per-chip pipelined VMEM budget
# ---------------------------------------------------------------------------
def _vmem_capacity_bytes() -> int:
    try:
        return int(pltpu.get_tpu_info().vmem_capacity_bytes)
    except Exception:
        return 64 * 1024 * 1024          # conservative (v7x-sized) fallback


def _choose_tiles(S, B, D, itemsize, x_block_budget):
    row_bytes = D * itemsize             # one (s, b, :) lane row
    full_batch_bytes = B * row_bytes
    if full_batch_bytes <= x_block_budget:
        tb = B                           # keep the full batch in one block
        ts = max(1, min(S, x_block_budget // full_batch_bytes))
        # Keep >= 4 grid steps along the (parallel) seq axis so v7x's two
        # TensorCores both get work (no-op cost on single-TC v5e/v6e).
        ts = min(ts, max(1, pl.cdiv(S, 4)))
    else:
        ts = 1
        # Round to a multiple of 32: covers the sublane multiple for
        # f32 (8) / bf16 (16) / int8-fp8 (32) packed layouts.
        tb = max(8, (x_block_budget // row_bytes) // 32 * 32)
        tb = min(tb, B)
    return ts, tb


def _on_tpu() -> bool:
    try:
        return jax.devices()[0].platform == "tpu"
    except Exception:
        return False


# ---------------------------------------------------------------------------
# Wrapper (the "module forward")
# ---------------------------------------------------------------------------
def positional_encoding_forward(token_embedding, pos_encoding, *, dropout_p,
                                seed=0, training=True):
    # NOTE: the dropout mask is a deterministic function of `seed`; callers
    # should pass a fresh seed per training step.
    S, B, D = token_embedding.shape
    x = token_embedding
    pe = pos_encoding[:S].astype(x.dtype)                 # (S, 1, D), input dtype
    seed_arr = jnp.asarray([seed], dtype=jnp.int32)
    itemsize = jnp.dtype(x.dtype).itemsize

    vmem_cap = _vmem_capacity_bytes()
    # x-in and out are double-buffered (2x in + 2x out = ~4x the x block) plus
    # the small resident pe tile; budget ~= limit/5 keeps headroom on every chip.
    vmem_limit = min(int(vmem_cap * 3 // 4), 96 * 1024 * 1024)
    x_block_budget = max(1 << 20, vmem_limit // 5)
    ts, tb = _choose_tiles(S, B, D, itemsize, x_block_budget)

    # B is the innermost grid axis so the pe block (index depends only on the
    # seq-tile index) stays resident across batch tiles.
    grid = (pl.cdiv(S, ts), pl.cdiv(B, tb))

    apply_dropout = bool(training) and float(dropout_p) > 0.0
    use_hw_prng = apply_dropout and _on_tpu()

    kernel = functools.partial(
        _pe_dropout_kernel,
        dropout_p=float(dropout_p), apply_dropout=apply_dropout,
        use_hw_prng=use_hw_prng,
        tile_s=ts, tile_b=tb, batch=B, dim=D)

    bytes_accessed = 2 * S * B * D * itemsize + S * D * itemsize
    cost = pl.CostEstimate(flops=4 * S * B * D, transcendentals=0,
                           bytes_accessed=bytes_accessed)

    return pl.pallas_call(
        kernel,
        out_shape=jax.ShapeDtypeStruct((S, B, D), x.dtype),
        grid_spec=pltpu.PrefetchScalarGridSpec(
            num_scalar_prefetch=1,                         # seed -> SMEM
            grid=grid,
            in_specs=[
                pl.BlockSpec((ts, tb, D), lambda si, bj, sref: (si, bj, 0)),
                pl.BlockSpec((ts, 1, D),  lambda si, bj, sref: (si, 0, 0)),
            ],
            out_specs=pl.BlockSpec((ts, tb, D), lambda si, bj, sref: (si, bj, 0)),
        ),
        compiler_params=pltpu.CompilerParams(
            dimension_semantics=("parallel", "parallel"),  # megacore-shardable
            vmem_limit_bytes=vmem_limit,
        ),
        cost_estimate=cost,
    )(seed_arr, x, pe)


# ---------------------------------------------------------------------------
if __name__ == "__main__":
    # Small shapes consistent with the module's forward: (seq, batch, dim_model)
    SEQ, BATCH, DIM_MODEL, MAX_LEN = 8, 2, 32, 16
    DROPOUT_P = 0.1

    key = jax.random.PRNGKey(0)
    x = jax.random.normal(key, (SEQ, BATCH, DIM_MODEL), dtype=jnp.float32)
    pos_encoding = make_pos_encoding(MAX_LEN, DIM_MODEL)   # (max_len, 1, dim_model)

    # Eval mode: dropout is identity -> must match the pure-JAX reference.
    out_eval = positional_encoding_forward(
        x, pos_encoding, dropout_p=DROPOUT_P, training=False)
    jax.block_until_ready(out_eval)
    ref = x + pos_encoding[:SEQ]
    assert out_eval.shape == (SEQ, BATCH, DIM_MODEL)
    assert jnp.allclose(out_eval, ref, atol=1e-6), "eval-mode mismatch"

    # Training mode: every element is either dropped (0) or scaled by 1/(1-p).
    out_train = positional_encoding_forward(
        x, pos_encoding, dropout_p=DROPOUT_P, seed=1234, training=True)
    jax.block_until_ready(out_train)
    assert out_train.shape == (SEQ, BATCH, DIM_MODEL)
    scaled = ref / (1.0 - DROPOUT_P)
    ok = jnp.isclose(out_train, scaled, rtol=1e-5, atol=1e-5) | (out_train == 0.0)
    assert bool(jnp.all(ok)), "training-mode values are not in {0, x/(1-p)}"
    zero_frac = float(jnp.mean((out_train == 0.0).astype(jnp.float32)))
    assert 0.0 < zero_frac < 0.5, f"implausible dropout rate {zero_frac}"

    print("KERNEL_OK")
</pallas_src>

<mosaic_0001>
module attributes {stable_mosaic.version = 11 : i64} {
  func.func @_pe_dropout_kernel(%arg0: i32, %arg1: i32, %arg2: memref<1xi32, #tpu.memory_space<smem>>, %arg3: memref<2x2x32xf32, #tpu.memory_space<vmem>>, %arg4: memref<2x1x32xf32, #tpu.memory_space<vmem>>, %arg5: memref<2x2x32xf32, #tpu.memory_space<vmem>>) attributes {dimension_semantics = [#tpu.dimension_semantics<parallel>, #tpu.dimension_semantics<parallel>], iteration_bounds = array<i64: 4, 1>, scalar_prefetch = 1 : i64, scratch_operands = 0 : i64, tpu.core_type = #tpu.core_type<tc>, window_params = [{transform_indices = @transform_0, window_bounds = array<i64: 2, 2, 32>}, {transform_indices = @transform_1, window_bounds = array<i64: 2, 1, 32>}, {transform_indices = @transform_2, window_bounds = array<i64: 2, 2, 32>}]} {
    %c0 = arith.constant 0 : index
    %c0_0 = arith.constant 0 : index
    %c0_1 = arith.constant 0 : index
    %0 = vector.load %arg3[%c0, %c0_0, %c0_1] : memref<2x2x32xf32, #tpu.memory_space<vmem>>, vector<2x2x32xf32>
    %c0_2 = arith.constant 0 : index
    %c0_3 = arith.constant 0 : index
    %c0_4 = arith.constant 0 : index
    %1 = vector.load %arg4[%c0_2, %c0_3, %c0_4] : memref<2x1x32xf32, #tpu.memory_space<vmem>>, vector<2x1x32xf32>
    %2 = vector.broadcast %1 : vector<2x1x32xf32> to vector<2x2x32xf32>
    %3 = arith.addf %0, %2 : vector<2x2x32xf32>
    %c0_5 = arith.constant 0 : index
    %c0_6 = arith.constant 0 : index
    %c0_7 = arith.constant 0 : index
    %4 = vector.load %arg5[%c0_5, %c0_6, %c0_7] : memref<2x2x32xf32, #tpu.memory_space<vmem>>, vector<2x2x32xf32>
    tpu.vector_store %arg5[%c0_5, %c0_6, %c0_7], %3 {strides = array<i32>} : memref<2x2x32xf32, #tpu.memory_space<vmem>>, vector<2x2x32xf32>,
    return
  }
  func.func @transform_0(%arg0: i32, %arg1: i32, %arg2: memref<1xi32, #tpu.memory_space<smem>>) -> (i32, i32, i32) {
    %c0_i32 = arith.constant 0 : i32
    %c0_i32_0 = arith.constant 0 : i32
    return %arg0, %arg1, %c0_i32 : i32, i32, i32
  }
  func.func @transform_1(%arg0: i32, %arg1: i32, %arg2: memref<1xi32, #tpu.memory_space<smem>>) -> (i32, i32, i32) {
    %c0_i32 = arith.constant 0 : i32
    %c0_i32_0 = arith.constant 0 : i32
    %c0_i32_1 = arith.constant 0 : i32
    return %arg0, %c0_i32, %c0_i32_0 : i32, i32, i32
  }
  func.func @transform_2(%arg0: i32, %arg1: i32, %arg2: memref<1xi32, #tpu.memory_space<smem>>) -> (i32, i32, i32) {
    %c0_i32 = arith.constant 0 : i32
    %c0_i32_0 = arith.constant 0 : i32
    return %arg0, %arg1, %c0_i32 : i32, i32, i32
  }
}

</mosaic_0001>

<bundles_post_ra>
// kernel: tpu_custom_call.1
= control target key start
LH: loop header
LB: loop body
LE: loop exit
PB: predicated region body
PF: predicated region fallthrough
CT: control target
= control target key end

     0   :  { %9 = vsyncpa [#allocation5], 0  ;;  %s865_s0 = inlined_call_operand.<no memory space> [shape: s32[1], index: 0, kind: input, shape index: {}]   ;;  %s866_s1 = inlined_call_operand.hbm [shape: f32[8,2,32], index: 1, kind: input, shape index: {}]   ;;  %s867_s2 = inlined_call_operand.hbm [shape: f32[8,1,32], index: 2, kind: input, shape index: {}]   ;;  %s868_s3 = inlined_call_operand.hbm [shape: f32[8,2,32], index: 3, kind: output, shape index: {}]  }
   0x1   :  { %11 = vsyncpa [#allocation5 + $0x1], 0 }
   0x2   :  { %12 = vsyncpa [#allocation8], 0 }
   0x3   :  { %14 = vsyncpa [#allocation8 + $0x1], 0 }
   0x4   :  { %15 = vsyncpa [#allocation6], 0 }
   0x5   :  { %17 = vsyncpa [#allocation6 + $0x1], 0  ;;  %s642_s12 = smov 0   ;;  %s644_s13 = smov 0  }
   0x6   :  { %s646_s0 = smov 0   ;;  %s648_s14 = smov 0  }
   0x7   :  { %s650_s15 = smov 0   ;;  %s652_s16 = smov 0  }
   0x8 LB: > { %s368_s17 = sadd.s32 4294967295, %s611_s16   ;;  %s369_s18 = sadd.s32 4294967294, %s611_s16   ;;  %s611_s16 = sphi %s652_s16, %s23_s16   ;;  %s607_s15 = sphi %s650_s15, %s885_s15   ;;  %s603_s14 = sphi %s648_s14, %s884_s14   ;;  %s599_s0 = sphi %s646_s0, %s883_s0   ;;  %s595_s13 = sphi %s644_s13, %s882_s13   ;;  %s591_s12 = sphi %s642_s12, %s881_s12  }
   0x9   : > { %s35_s19 = sadd.s32 1, %s607_s15  ;;  %s44_s20 = sadd.s32 1, %s599_s0 }
   0xa   : > { %p37_p0 = scmp.ge.s32.totalorder %s35_s19, 4  ;;  %p51_p1 = scmp.ne.s32.totalorder %s599_s0, %s595_s13 }
   0xb   : > { %p52_p2 = scmp.eq.s32.totalorder %s611_s16, 0  ;;  %p57_p3 = scmp.ne.s32.totalorder %s595_s13, %s591_s12 }
   0xc   : > { %s887_s19 = smov (%p37_p0, %s35_s19), 0  ;;  %p58_p5 = scmp.eq.s32.totalorder %s368_s17, 0 }
   0xd   : > { %p683_p4 = por %p52_p2, %p51_p1  ;;  %s39_s22 = ssub.s32 %s607_s15, %s887_s19 }
   0xe   : > { %p109_p6 = scmp.eq.s32.totalorder %s368_s17, 3  ;;  %p42_p7 = scmp.eq.s32.totalorder %s39_s22, 0 }
   0xf   : > { %p689_p8 = por %p58_p5, %p57_p3  ;;  %p115_p10 = scmp.eq.s32.totalorder %s369_s18, 3 }
  0x10   : > { %p693_p9 = por %p109_p6, %p51_p1  ;;  %p409_p12 = scmp.lt.s32.totalorder %s611_s16, 4 }
  0x11   : > { %s872_s23 = scalar_select %p689_p8, 1, 0 }
  0x12   : > { %s873_s24 = scalar_select %p693_p9, 1, 0 }
  0x13   : > { %s698_s25 = scalar_select %p42_p7, %s599_s0, %s44_s20  }
  0x14   : > { %p700_p11 = por %p115_p10, %p57_p3  ;;  %s706_s27 = sand.u32 1, %s599_s0  }
  0x15   : > { %s372_s28 = sshll.u32 %s706_s27, 2  ;;  %s389_s29 = sshll.u32 %s607_s15, 6 }
  0x16   : > { %s874_s26 = scalar_select %p700_p11, 1, 0 }
  0x17   : > { %s713_s5 = scalar_lea.hbm %s866_s1, %s389_s29  ;;  %s139_s6 = scalar_lea.vmem [#allocation4], %s372_s28 }
  0x18   : > { %s147_s7 = sshll.u32 %s139_s6, 4  ;;  %p719_p13 = pnand %p409_p12, %p683_p4  ;;  %s715_s7 = int_to_ptr.vmem [resolvable:$true] %s147_s7 }
  0x19   : > { %s136_s9 = scalar_lea.sflag [#allocation5], %s706_s27  ;;  %s465_s10 = scalar_lea.hbm %s713_s5, 64 }
  0x1a   : > { %p466_p1 = scmp.ne.s32.totalorder %s713_s5, %s465_s10  ;;  %p467_p2 = pneg %p719_p13 }
  0x1b   : > { %s470_s18 = scalar_lea.hbm %s866_s1, 256  ;;  %p471_p4 = scmp.lt.u32.totalorder %s713_s5, %s866_s1 }
  0x1c   : > { %p468_p3 = pnand %p467_p2, %p466_p1  ;;  %p472_p6 = scmp.lt.u32.totalorder %s470_s18, %s465_s10 }
  0x1d   : > { %p474_p10 = scmp.lt.u32.totalorder %s465_s10, %s713_s5 }
  0x1e   : > { %p469_p5 = pneg %p468_p3  ;;  %p473_p7 = por %p472_p6, %p471_p4 }
  0x20   : > { %p475_p12 = por %p474_p10, %p473_p7 }
  0x22   : > { %p476_p0 = pnand %p475_p12, %p469_p5 }
  0x24   : > { %479 = shalt.err (!%p476_p0)
}
  0x25   : > { %s480_s22 = scalar_lea.vmem %s715_s7, 64  ;;  %s613_s28 = smov [#allocation4]  }
  0x26   : > { %p481_p1 = scmp.ne.s32.totalorder %s715_s7, %s480_s22  ;;  %s485_s29 = sshll.u32 %s613_s28, 4  ;;  %s486_s29 = int_to_ptr.vmem [resolvable:$false] %s485_s29 }
  0x27   : > { %s487_s30 = scalar_lea.vmem %s486_s29, 128  ;;  %p488_p9 = scmp.lt.s32.totalorder %s715_s7, %s486_s29 }
  0x28   : > { %p483_p3 = pnand %p481_p1, %p467_p2  ;;  %p489_p4 = scmp.lt.s32.totalorder %s487_s30, %s480_s22 }
  0x2a   : > { %p484_p11 = pneg %p483_p3  ;;  %p490_p6 = por %p489_p4, %p488_p9 }
  0x2c   : > { %p491_p7 = pnand %p490_p6, %p484_p11 }
  0x2e   : > { %494 = shalt.err (!%p491_p7)
}
  0x2f   : > { %s614_s4 = smov 32   ;;  %s615_s6 = smov 2  }
  0x30   : > { %401 = dma.hbm_to_vmem [thread:$0]  (!%p719_p13), %s713_s5, 64, %s715_s7, %s136_s9, %s614_s4, %s614_s4, %s615_s6  }
  0x31   : > { %p176_p0 = scmp.lt.s32.totalorder %s611_s16, 5  ;;  %s375_s10 = sshll.u32 %s706_s27, 1 }
  0x32   : > { %s390_s11 = sshll.u32 %s607_s15, 5  ;;  %p876_p9 = scmp.ge.s32.totalorder %s611_s16, 1 }
  0x33   : > { %s764_s21 = scalar_lea.hbm %s867_s2, %s390_s11  ;;  %s161_s22 = scalar_lea.vmem [#allocation7], %s375_s10 }
  0x34   : > { %p757_p11 = pnand %p876_p9, %p176_p0  ;;  %s168_s28 = sshll.u32 %s161_s22, 4  ;;  %s766_s28 = int_to_ptr.vmem [resolvable:$true] %s168_s28 }
  0x35   : > { %s158_s5 = scalar_lea.sflag [#allocation8], %s706_s27  ;;  %s495_s7 = scalar_lea.hbm %s764_s21, 32 }
  0x36   : > { %p496_p5 = scmp.ne.s32.totalorder %s764_s21, %s495_s7  ;;  %s500_s30 = scalar_lea.hbm %s867_s2, 128 }
  0x37   : > { %p501_p1 = scmp.lt.u32.totalorder %s764_s21, %s867_s2  ;;  %p502_p3 = scmp.lt.u32.totalorder %s500_s30, %s495_s7 }
  0x38   : > { %p498_p10 = pnand %p496_p5, %p467_p2  ;;  %p504_p6 = scmp.lt.u32.totalorder %s495_s7, %s764_s21 }
  0x39   : > { %p503_p4 = por %p502_p3, %p501_p1 }
  0x3a   : > { %p499_p12 = pneg %p498_p10 }
  0x3b   : > { %p505_p7 = por %p504_p6, %p503_p4 }
  0x3d   : > { %p506_p0 = pnand %p505_p7, %p499_p12 }
  0x3f   : > { %509 = shalt.err (!%p506_p0)
}
  0x40   : > { %s510_s10 = scalar_lea.vmem %s766_s28, 32  ;;  %s616_s11 = smov [#allocation7]  }
  0x41   : > { %p511_p9 = scmp.ne.s32.totalorder %s766_s28, %s510_s10  ;;  %s515_s18 = sshll.u32 %s616_s11, 4  ;;  %s516_s18 = int_to_ptr.vmem [resolvable:$false] %s515_s18 }
  0x42   : > { %s517_s20 = scalar_lea.vmem %s516_s18, 64  ;;  %p518_p8 = scmp.lt.s32.totalorder %s766_s28, %s516_s18 }
  0x43   : > { %p513_p5 = pnand %p511_p9, %p467_p2  ;;  %p519_p1 = scmp.lt.s32.totalorder %s517_s20, %s510_s10 }
  0x45   : > { %p514_p10 = pneg %p513_p5  ;;  %p520_p3 = por %p519_p1, %p518_p8 }
  0x47   : > { %p521_p4 = pnand %p520_p3, %p514_p10 }
  0x49   : > { %524 = shalt.err (!%p521_p4)
}
  0x4a   : > { %s617_s22 = smov 16   ;;  %s618_s7 = smov 1  }
  0x4b   : > { %404 = dma.hbm_to_vmem [thread:$0]  (!%p719_p13), %s764_s21, 32, %s766_s28, %s158_s5, %s617_s22, %s617_s22, %s618_s7  }
  0x4c   : > { %180 = sbr.rel (%p757_p11) target bundleno = 114 (0x72), region = 28  ;;  %s797_s9 = sand.u32 (!%p757_p11), 1, %s595_s13  }
  0x4d   : > { %s379_s29 = sshll.u32 (!%p757_p11), %s797_s9, 2  ;;  %s183_s30 = scalar_lea.sflag (!%p757_p11), [#allocation5], %s797_s9 }
  0x4e   : > { %s186_s4 = scalar_lea.vmem (!%p757_p11), [#allocation4], %s379_s29  ;;  %p878_p8 = scmp.ne.s32.totalorder (!%p757_p11), %s872_s23, 0 }
  0x53   : > { %578 = dma.done.wait (%p878_p8), %s183_s30, 64  }
  0x54   : > { %580 = vsyncadd (%p878_p8), %s183_s30, 4294967232  ;;  %s380_s27 = sshll.u32 %s797_s9, 1  ;;  %s192_s8 = scalar_lea.sflag [#allocation8], %s797_s9 }
  0x55   : > { %s195_s17 = scalar_lea.vmem [#allocation7], %s380_s27 }
  0x56   : > { %582 = dma.done.wait (%p878_p8), %s192_s8, 32  }
  0x57   : > { %584 = vsyncadd (%p878_p8), %s192_s8, 4294967264  ;;  %s220_s21 = scalar_lea.vmem [#allocation9], %s379_s29  ;;  %s391_s5 = sshll.u32 %s603_s14, 6  ;;  %vm242_vm0 = vcmask 254976   ;;  %v224_v0 = vld [vmem:[%s186_s4] sm:$0x3] }
  0x58   : > { %s260_s28 = sshll.u32 %s220_s21, 4  ;;  %v382_v1 = vld [vmem:[%s195_s17] ss:$0 sm:$0xff]  ;;  %v225_v2 = vld [vmem:[%s186_s4 + $0x2] sm:$0x3]  ;;  %s817_s10 = scalar_lea.hbm %s868_s3, %s391_s5  ;;  %s812_s28 = int_to_ptr.vmem [resolvable:$true] %s260_s28 }
  0x59   : > { %v240_v3 = vadd.f32 %v382_v1, %v224_v0  ;;  %v383_v4 = vld [vmem:[%s195_s17 + $0x1] ss:$0 sm:$0xff]  ;;  %s246_s14 = scalar_lea.sflag [#allocation6], %s797_s9  ;;  %s525_s11 = scalar_lea.vmem %s812_s28, 64 }
  0x5a   : > { %v241_v5 = vadd.f32 %v383_v4, %v225_v2  ;;  %p526_p13 = scmp.ne.s32.totalorder %s812_s28, %s525_s11  ;;  %p879_p2 = scmp.ne.s32.totalorder %s873_s24, 0 }
  0x5b   : > { %243 = vst.msk [vmem:[%s220_s21] sm:$0x3] %vm242_vm0, %v240_v3  ;;  %s619_s18 = smov [#allocation9]  }
  0x5c   : > { %244 = vst.msk [vmem:[%s220_s21 + $0x2] sm:$0x3] %vm242_vm0, %v241_v5  ;;  %p527_p11 = pnand %p526_p13, %p879_p2  ;;  %s529_s20 = sshll.u32 %s619_s18, 4  ;;  %s530_s20 = int_to_ptr.vmem [resolvable:$false] %s529_s20 }
  0x5d   : > { %s531_s22 = scalar_lea.vmem %s530_s20, 128  ;;  %p532_p6 = scmp.lt.s32.totalorder %s812_s28, %s530_s20 }
  0x5e   : > { %p528_p12 = pneg %p527_p11  ;;  %p533_p7 = scmp.lt.s32.totalorder %s531_s22, %s525_s11 }
  0x60   : > { %p534_p0 = por %p533_p7, %p532_p6 }
  0x62   : > { %p535_p9 = pnand %p534_p0, %p528_p12 }
  0x64   : > { %538 = shalt.err (!%p535_p9)
}
  0x65   : > { %s539_s7 = scalar_lea.hbm %s817_s10, 64  ;;  %s543_s4 = scalar_lea.hbm %s868_s3, 256 }
  0x66   : > { %p540_p5 = scmp.ne.s32.totalorder %s817_s10, %s539_s7  ;;  %p544_p3 = scmp.lt.u32.totalorder %s817_s10, %s868_s3 }
  0x67   : > { %p545_p4 = scmp.lt.u32.totalorder %s543_s4, %s539_s7  ;;  %p547_p13 = scmp.lt.u32.totalorder %s539_s7, %s817_s10 }
  0x68   : > { %p541_p10 = pnand %p540_p5, %p879_p2 }
  0x69   : > { %p546_p8 = por %p545_p4, %p544_p3 }
  0x6a   : > { %p542_p1 = pneg %p541_p10 }
  0x6b   : > { %p548_p11 = por %p547_p13, %p546_p8 }
  0x6d   : > { %p549_p12 = pnand %p548_p11, %p542_p1 }
  0x6f   : > { %552 = shalt.err (!%p549_p12)
}
  0x70   : > { %s620_s17 = smov 32   ;;  %s621_s21 = smov 2  }
  0x71   : > { %396 = dma.vmem_to_hbm [thread:$0]  (%p879_p2), %s812_s28, 64, %s817_s10, %s246_s14, %s620_s17, %s620_s17, %s621_s21  }
  0x72 PF: > { %p410_p6 = scmp.ge.s32.totalorder %s611_s16, 2  ;;  %s275_s5 = sand.u32 1, %s591_s12  }
  0x73   : > { %p880_p7 = scmp.ne.s32.totalorder %s874_s26, 0  ;;  %s276_s6 = scalar_lea.sflag [#allocation6], %s275_s5 }
  0x75   : > { %p406_p0 = pnand %p410_p6, %p880_p7 }
  0x77   : > { %586 = dma.done.wait (!%p406_p0), %s276_s6, 64  }
  0x78   : > { %588 = vsyncadd (!%p406_p0), %s276_s6, 4294967232  ;;  %s23_s16 = sadd.s32 1, %s611_s16   ;;  %s881_s12 = smov %s595_s13 }
  0x79   : > { %p20_p9 = scmp.ge.s32.totalorder %s23_s16, 6   ;;  %s882_s13 = smov %s599_s0 }
  0x7a   : > { %s883_s0 = smov %s698_s25  ;;  %s884_s14 = smov %s607_s15 }
  0x7b   : > { %s885_s15 = smov %s887_s19  ;;  %22 = sbr.rel (!%p20_p9) target bundleno = 8 (0x8), region = 86 }
  0x82   :  { %281 = vsyncpa [#allocation5], 1 }
  0x83   :  { %283 = vsyncpa [#allocation5 + $0x1], 1 }
  0x84   :  { %284 = vsyncpa [#allocation8], 1 }
  0x85   :  { %286 = vsyncpa [#allocation8 + $0x1], 1 }
  0x86   :  { %287 = vsyncpa [#allocation6], 1 }
  0x87   :  { %289 = vsyncpa [#allocation6 + $0x1], 1 }

</bundles_post_ra>
